<compile_context>
chip_gen: v7x
topology: tpu7x:2x2x1
jax: 0.10.0
libtpu: 0.0.40
codegen_flags: <defaults>
</compile_context>

<pallas_src>
import jax
import jax.numpy as jnp
from jax import lax
from jax.experimental import pallas as pl
from jax.experimental.pallas import tpu as pltpu


def _round_up(x, m):
    return ((x + m - 1) // m) * m


def _num_tensorcores_per_chip():
    """2 on v7x (two TensorCores per chip), else 1.  Best-effort heuristic;
    falling back to 1 is always correct (just loses the 2-way split)."""
    try:
        kind = jax.devices()[0].device_kind.lower()
        if "v7" in kind or "7x" in kind:
            return 2
    except Exception:
        pass
    return 1


def _critic_fwd_kernel(x_ref, w1_ref, b1_ref, w2_ref, b2_ref, w3_ref, b3_ref,
                       o_ref):
    # Layer 1: (TB,S) @ (S,HP) + (1,HP) -> relu              (MXU + VPU)
    h = jnp.maximum(
        jnp.dot(x_ref[...], w1_ref[...], preferred_element_type=jnp.float32)
        + b1_ref[...],
        0.0,
    )
    # Layer 2: (TB,HP) @ (HP,HP) + (1,HP) -> relu            (MXU + VPU)
    h = jnp.maximum(
        jnp.dot(h, w2_ref[...], preferred_element_type=jnp.float32)
        + b2_ref[...],
        0.0,
    )
    # Value head: contract HP between w3_row (1,HP) and h (TB,HP) -> (1,TB).
    # Same contraction pattern as q@k^T in flash attention; the result is
    # already lane-dense, so the store below is a full-width unmasked vst.
    v = lax.dot_general(w3_ref[...], h, (((1,), (1,)), ((), ())),
                        preferred_element_type=jnp.float32)
    o_ref[...] = (v + b3_ref[0]).astype(o_ref.dtype)


def prepare_critic_params(w1_t, b1, w2_t, b2, w3_t, b3):
    """One-time padding of Critic parameters to lane-aligned shapes.

    w1_t: (S,H); b1: (H,); w2_t: (H,H); b2: (H,); w3_t: (H,1); b3: (1,).
    Returns (w1_p (S,HP), b1_p (1,HP), w2_p (HP,HP), b2_p (1,HP),
             w3_p (1,HP), b3_p (1,)) with HP = round_up(H, 128).
    Zero-padded hidden columns stay exactly zero through the ReLUs, so the
    forward value is unchanged.
    """
    S, H = w1_t.shape
    HP = max(128, _round_up(H, 128))
    f32 = jnp.float32
    w1_p = jnp.zeros((S, HP), f32).at[:, :H].set(w1_t.astype(f32))
    b1_p = jnp.zeros((1, HP), f32).at[:, :H].set(b1.reshape(1, H).astype(f32))
    w2_p = jnp.zeros((HP, HP), f32).at[:H, :H].set(w2_t.astype(f32))
    b2_p = jnp.zeros((1, HP), f32).at[:, :H].set(b2.reshape(1, H).astype(f32))
    w3_p = jnp.zeros((1, HP), f32).at[:, :H].set(w3_t.reshape(1, H).astype(f32))
    b3_p = b3.reshape(1).astype(f32)
    return w1_p, b1_p, w2_p, b2_p, w3_p, b3_p


def critic_forward(state, params_padded, *, max_rows_per_tile=1024):
    """state: (B,S) f32; params_padded: output of prepare_critic_params.
    Returns (B,1) float32."""
    w1_p, b1_p, w2_p, b2_p, w3_p, b3_p = params_padded
    B, S = state.shape
    HP = w1_p.shape[1]

    # One batch tile per TensorCore when it fits in VMEM: no per-step pipeline
    # overhead on single-TC v5e/v6e, an even 2-way split on v7x.
    num_tc = _num_tensorcores_per_chip()
    TB = min(max_rows_per_tile, max(8, _round_up(pl.cdiv(B, num_tc), 8)))
    Bp = _round_up(B, TB)
    grid_b = Bp // TB

    x = state.astype(jnp.float32)
    if Bp != B:
        x = jnp.pad(x, ((0, Bp - B), (0, 0)))

    flops = 2 * Bp * (S * HP + HP * HP + HP)
    bytes_accessed = 4 * (Bp * S + S * HP + HP * HP + 3 * HP + 1 + Bp)

    out = pl.pallas_call(
        _critic_fwd_kernel,
        out_shape=jax.ShapeDtypeStruct((grid_b, TB), jnp.float32),
        grid=(grid_b,),
        in_specs=[
            pl.BlockSpec((TB, S), lambda i: (i, 0)),    # state tile (streamed)
            pl.BlockSpec((S, HP), lambda i: (0, 0)),    # W1 (VMEM-resident)
            pl.BlockSpec((1, HP), lambda i: (0, 0)),    # b1
            pl.BlockSpec((HP, HP), lambda i: (0, 0)),   # W2 (VMEM-resident)
            pl.BlockSpec((1, HP), lambda i: (0, 0)),    # b2
            pl.BlockSpec((1, HP), lambda i: (0, 0)),    # W3 row (VMEM-resident)
            pl.BlockSpec(memory_space=pltpu.MemorySpace.SMEM),  # b3 scalar
        ],
        out_specs=pl.BlockSpec((1, TB), lambda i: (i, 0)),  # lane-dense row
        compiler_params=pltpu.CompilerParams(
            dimension_semantics=("parallel",),  # v7x: tiles split across 2 TCs
        ),
        cost_estimate=pl.CostEstimate(
            flops=flops, transcendentals=0, bytes_accessed=bytes_accessed),
    )(x, w1_p, b1_p, w2_p, b2_p, w3_p, b3_p)

    # (grid_b, TB) row-major == batch order; reshape back to (B, 1).
    return out.reshape(Bp, 1)[:B]


def init_critic_params(key, state_dim, net_width):
    """nn.Linear-style init (uniform +/- 1/sqrt(fan_in)); weights stored
    pre-transposed as (in, out)."""
    k1, k2, k3, k4, k5, k6 = jax.random.split(key, 6)

    def lin(kw, kb, fan_in, fan_out):
        bound = 1.0 / jnp.sqrt(fan_in)
        w_t = jax.random.uniform(kw, (fan_in, fan_out), jnp.float32, -bound, bound)
        b = jax.random.uniform(kb, (fan_out,), jnp.float32, -bound, bound)
        return w_t, b

    w1_t, b1 = lin(k1, k2, state_dim, net_width)   # C1
    w2_t, b2 = lin(k3, k4, net_width, net_width)   # C2
    w3_t, b3 = lin(k5, k6, net_width, 1)           # C3 (value head)
    return (w1_t, b1, w2_t, b2, w3_t, b3)


if __name__ == "__main__":
    key = jax.random.PRNGKey(0)
    k_params, k_state = jax.random.split(key)

    # Shapes consistent with the module; batch large enough to exercise the
    # batch tiling while staying tiny.
    batch, state_dim, net_width = 512, 16, 32

    w1_t, b1, w2_t, b2, w3_t, b3 = init_critic_params(k_params, state_dim, net_width)
    state = jax.random.normal(k_state, (batch, state_dim), jnp.float32)

    # Pad/reformat parameters ONCE, outside the forward path.
    params_padded = prepare_critic_params(w1_t, b1, w2_t, b2, w3_t, b3)
    params_padded = jax.block_until_ready(params_padded)

    out = critic_forward(state, params_padded)
    out = jax.block_until_ready(out)

    # Pure-JAX reference of the same forward semantics.
    h1 = jnp.maximum(state @ w1_t + b1, 0.0)
    h2 = jnp.maximum(h1 @ w2_t + b2, 0.0)
    ref = h2 @ w3_t + b3

    assert out.shape == (batch, 1), out.shape
    assert jnp.allclose(out, ref, atol=1e-4, rtol=1e-4), "mismatch vs reference"

    print("KERNEL_OK")
</pallas_src>

<mosaic_0001>
module attributes {stable_mosaic.version = 11 : i64} {
  func.func @_critic_fwd_kernel(%arg0: i32, %arg1: memref<512x16xf32, #tpu.memory_space<vmem>>, %arg2: memref<16x128xf32, #tpu.memory_space<vmem>>, %arg3: memref<1x128xf32, #tpu.memory_space<vmem>>, %arg4: memref<128x128xf32, #tpu.memory_space<vmem>>, %arg5: memref<1x128xf32, #tpu.memory_space<vmem>>, %arg6: memref<1x128xf32, #tpu.memory_space<vmem>>, %arg7: memref<1xf32, #tpu.memory_space<smem>>, %arg8: memref<1x512xf32, #tpu.memory_space<vmem>>) attributes {dimension_semantics = [#tpu.dimension_semantics<parallel>], iteration_bounds = array<i64: 1>, scalar_prefetch = 0 : i64, scratch_operands = 0 : i64, tpu.core_type = #tpu.core_type<tc>, window_params = [{transform_indices = @transform_0, window_bounds = array<i64: 512, 16>}, {pipeline_mode = #tpu.pipeline_mode<synchronous>, transform_indices = @transform_1, window_bounds = array<i64: 16, 128>}, {pipeline_mode = #tpu.pipeline_mode<synchronous>, transform_indices = @transform_2, window_bounds = array<i64: 1, 128>}, {pipeline_mode = #tpu.pipeline_mode<synchronous>, transform_indices = @transform_3, window_bounds = array<i64: 128, 128>}, {pipeline_mode = #tpu.pipeline_mode<synchronous>, transform_indices = @transform_4, window_bounds = array<i64: 1, 128>}, {pipeline_mode = #tpu.pipeline_mode<synchronous>, transform_indices = @transform_5, window_bounds = array<i64: 1, 128>}, {transform_indices = @transform_6, window_bounds = array<i64: 1>}, {transform_indices = @transform_7, window_bounds = array<i64: 1, 512>}]} {
    %c0 = arith.constant 0 : index
    %c0_0 = arith.constant 0 : index
    %0 = vector.load %arg1[%c0, %c0_0] : memref<512x16xf32, #tpu.memory_space<vmem>>, vector<512x16xf32>
    %c0_1 = arith.constant 0 : index
    %c0_2 = arith.constant 0 : index
    %1 = vector.load %arg2[%c0_1, %c0_2] : memref<16x128xf32, #tpu.memory_space<vmem>>, vector<16x128xf32>
    %cst = arith.constant dense<0.000000e+00> : vector<512x128xf32>
    %2 = tpu.matmul %0, %1, %cst {dimension_numbers = #tpu.dot_dimension_numbers<[1], [0], [0], [1], [0, 0, 1, 1], [], []>} : vector<512x16xf32>, vector<16x128xf32>, vector<512x128xf32> -> vector<512x128xf32>
    %c0_3 = arith.constant 0 : index
    %c0_4 = arith.constant 0 : index
    %3 = vector.load %arg3[%c0_3, %c0_4] : memref<1x128xf32, #tpu.memory_space<vmem>>, vector<1x128xf32>
    %4 = vector.broadcast %3 : vector<1x128xf32> to vector<512x128xf32>
    %5 = arith.addf %2, %4 : vector<512x128xf32>
    %cst_5 = arith.constant 0.000000e+00 : f32
    %6 = vector.broadcast %cst_5 : f32 to vector<512x128xf32>
    %7 = arith.maximumf %5, %6 : vector<512x128xf32>
    %c0_6 = arith.constant 0 : index
    %c0_7 = arith.constant 0 : index
    %8 = vector.load %arg4[%c0_6, %c0_7] : memref<128x128xf32, #tpu.memory_space<vmem>>, vector<128x128xf32>
    %cst_8 = arith.constant dense<0.000000e+00> : vector<512x128xf32>
    %9 = tpu.matmul %7, %8, %cst_8 {dimension_numbers = #tpu.dot_dimension_numbers<[1], [0], [0], [1], [0, 0, 1, 1], [], []>} : vector<512x128xf32>, vector<128x128xf32>, vector<512x128xf32> -> vector<512x128xf32>
    %c0_9 = arith.constant 0 : index
    %c0_10 = arith.constant 0 : index
    %10 = vector.load %arg5[%c0_9, %c0_10] : memref<1x128xf32, #tpu.memory_space<vmem>>, vector<1x128xf32>
    %11 = vector.broadcast %10 : vector<1x128xf32> to vector<512x128xf32>
    %12 = arith.addf %9, %11 : vector<512x128xf32>
    %cst_11 = arith.constant 0.000000e+00 : f32
    %13 = vector.broadcast %cst_11 : f32 to vector<512x128xf32>
    %14 = arith.maximumf %12, %13 : vector<512x128xf32>
    %c0_12 = arith.constant 0 : index
    %c0_13 = arith.constant 0 : index
    %15 = vector.load %arg6[%c0_12, %c0_13] : memref<1x128xf32, #tpu.memory_space<vmem>>, vector<1x128xf32>
    %cst_14 = arith.constant dense<0.000000e+00> : vector<1x512xf32>
    %16 = tpu.matmul %15, %14, %cst_14 {dimension_numbers = #tpu.dot_dimension_numbers<[1], [1], [0], [0], [0, 0, 1, 0], [], []>} : vector<1x128xf32>, vector<512x128xf32>, vector<1x512xf32> -> vector<1x512xf32>
    %c0_15 = arith.constant 0 : index
    %17 = memref.load %arg7[%c0_15] : memref<1xf32, #tpu.memory_space<smem>>
    %18 = vector.broadcast %17 : f32 to vector<1x512xf32>
    %19 = arith.addf %16, %18 : vector<1x512xf32>
    %c0_16 = arith.constant 0 : index
    %c0_17 = arith.constant 0 : index
    %20 = vector.load %arg8[%c0_16, %c0_17] : memref<1x512xf32, #tpu.memory_space<vmem>>, vector<1x512xf32>
    tpu.vector_store %arg8[%c0_16, %c0_17], %19 {strides = array<i32>} : memref<1x512xf32, #tpu.memory_space<vmem>>, vector<1x512xf32>,
    return
  }
  func.func @transform_0(%arg0: i32) -> (i32, i32) {
    %c0_i32 = arith.constant 0 : i32
    %c0_i32_0 = arith.constant 0 : i32
    return %arg0, %c0_i32 : i32, i32
  }
  func.func @transform_1(%arg0: i32) -> (i32, i32) {
    %c0_i32 = arith.constant 0 : i32
    %c0_i32_0 = arith.constant 0 : i32
    %c0_i32_1 = arith.constant 0 : i32
    return %c0_i32, %c0_i32_0 : i32, i32
  }
  func.func @transform_2(%arg0: i32) -> (i32, i32) {
    %c0_i32 = arith.constant 0 : i32
    %c0_i32_0 = arith.constant 0 : i32
    %c0_i32_1 = arith.constant 0 : i32
    return %c0_i32, %c0_i32_0 : i32, i32
  }
  func.func @transform_3(%arg0: i32) -> (i32, i32) {
    %c0_i32 = arith.constant 0 : i32
    %c0_i32_0 = arith.constant 0 : i32
    %c0_i32_1 = arith.constant 0 : i32
    return %c0_i32, %c0_i32_0 : i32, i32
  }
  func.func @transform_4(%arg0: i32) -> (i32, i32) {
    %c0_i32 = arith.constant 0 : i32
    %c0_i32_0 = arith.constant 0 : i32
    %c0_i32_1 = arith.constant 0 : i32
    return %c0_i32, %c0_i32_0 : i32, i32
  }
  func.func @transform_5(%arg0: i32) -> (i32, i32) {
    %c0_i32 = arith.constant 0 : i32
    %c0_i32_0 = arith.constant 0 : i32
    %c0_i32_1 = arith.constant 0 : i32
    return %c0_i32, %c0_i32_0 : i32, i32
  }
  func.func @transform_6(%arg0: i32) -> i32 {
    %c0_i32 = arith.constant 0 : i32
    %c0_i32_0 = arith.constant 0 : i32
    return %c0_i32 : i32
  }
  func.func @transform_7(%arg0: i32) -> (i32, i32) {
    %c0_i32 = arith.constant 0 : i32
    %c0_i32_0 = arith.constant 0 : i32
    return %arg0, %c0_i32 : i32, i32
  }
}

</mosaic_0001>

<bundles_post_ra>
// kernel: tpu_custom_call.1
= control target key start
LH: loop header
LB: loop body
LE: loop exit
PB: predicated region body
PF: predicated region fallthrough
CT: control target
= control target key end

     0   :  { %vm101_vm0 = vcmask 130048   ;;  %s2604_s0 = inlined_call_operand.vmem [shape: f32[512,16], index: 0, kind: input, shape index: {}]   ;;  %s2605_s1 = inlined_call_operand.vmem [shape: f32[16,128], index: 1, kind: input, shape index: {}]   ;;  %s2606_s2 = inlined_call_operand.vmem [shape: f32[1,128], index: 2, kind: input, shape index: {}]   ;;  %s2607_s3 = inlined_call_operand.vmem [shape: f32[128,128], index: 3, kind: input, shape index: {}]   ;;  %s2608_s4 = inlined_call_operand.vmem [shape: f32[1,128], index: 4, kind: input, shape index: {}]   ;;  %s2609_s5 = inlined_call_operand.vmem [shape: f32[1,128], index: 5, kind: input, shape index: {}]   ;;  %s2610_s6 = inlined_call_operand.<no memory space> [shape: f32[1], index: 6, kind: input, shape index: {}]   ;;  %s2611_s7 = inlined_call_operand.hbm [shape: f32[1,512], index: 7, kind: output, shape index: {}]  }
   0x1   :  { %v92_v0 = vld [vmem:[%s2605_s1] sm:$0xff]  ;;  %v93_v1 = vld [vmem:[%s2605_s1 + $0x8] sm:$0xff]  ;;  %v30_v5 = vld [vmem:[%s2604_s0 + $0x10] sm:$0xff] }
   0x2   :  { %v28_v2 = vld [vmem:[%s2604_s0] sm:$0xff]  ;;  %v1916_v3 = vpack.c.bf16 %v93_v1, %v92_v0  ;;  %v29_v4 = vld [vmem:[%s2604_s0 + $0x8] sm:$0xff]  ;;  %v31_v6 = vld [vmem:[%s2604_s0 + $0x18] sm:$0xff] }
   0x3   :  { %1692 = vmatprep.mubr.msk.f32.mxu0 %vm101_vm0, %v28_v2  ;;  %v32_v7 = vld [vmem:[%s2604_s0 + $0x20] sm:$0xff]  ;;  %v33_v8 = vld [vmem:[%s2604_s0 + $0x28] sm:$0xff]  ;;  %v34_v9 = vld [vmem:[%s2604_s0 + $0x30] sm:$0xff] }
   0x4   :  { %1917 = vmatprep.subr.bf16.mxu0 %v1916_v3  ;;  %v35_v10 = vld [vmem:[%s2604_s0 + $0x38] sm:$0xff]  ;;  %v36_v11 = vld [vmem:[%s2604_s0 + $0x40] sm:$0xff]  ;;  %v37_v12 = vld [vmem:[%s2604_s0 + $0x48] sm:$0xff] }
   0x5   :  { %1919 = vmatpush3.bf16.msra.mxu0 %v1916_v3  ;;  %v38_v13 = vld [vmem:[%s2604_s0 + $0x50] sm:$0xff]  ;;  %v743_v14 = vld [vmem:[%s2607_s3] sm:$0xff]  ;;  %v744_v15 = vld [vmem:[%s2607_s3 + $0x8] sm:$0xff] }
   0x6   :  { %v745_v16 = vld [vmem:[%s2607_s3 + $0x10] sm:$0xff]  ;;  %v1920_v17 = vpack.c.bf16 %v744_v15, %v743_v14  ;;  %v746_v18 = vld [vmem:[%s2607_s3 + $0x18] sm:$0xff]  ;;  %v747_v21 = vld [vmem:[%s2607_s3 + $0x20] sm:$0xff] }
   0x7   :  { %v39_v19 = vld [vmem:[%s2604_s0 + $0x58] sm:$0xff]  ;;  %v1924_v20 = vpack.c.bf16 %v746_v18, %v745_v16  ;;  %v748_v22 = vld [vmem:[%s2607_s3 + $0x28] sm:$0xff]  ;;  %v40_v23 = vld [vmem:[%s2604_s0 + $0x60] sm:$0xff] }
   0x8   :  { %1693 = vmatmul.mubr.msk.f32.vlgmr.msra.gmra.mrb[0].mxu0 %vm101_vm0, %v29_v4  ;;  %1921 = vmatprep.subr.bf16.mxu1 %v1920_v17 }
   0x9   :  { %1695 = vmatprep.mubr.msk.f32.mxu0 %vm101_vm0, %v30_v5  ;;  %1923 = vmatpush3.bf16.msra.mxu1 %v1920_v17 }
   0xc   :  { %1696 = vmatmul.mubr.msk.f32.gmra.mrb[2].mxu0 %vm101_vm0, %v31_v6 }
   0xd   :  { %1698 = vmatprep.mubr.msk.f32.mxu0 %vm101_vm0, %v32_v7 }
  0x10   :  { %1699 = vmatmul.mubr.msk.f32.gmra.mrb[4].mxu0 %vm101_vm0, %v33_v8 }
  0x11   :  { %1701 = vmatprep.mubr.msk.f32.mxu0 %vm101_vm0, %v34_v9 }
  0x14   :  { %1702 = vmatmul.mubr.msk.f32.gmra.mrb[6].mxu0 %vm101_vm0, %v35_v10 }
  0x15   :  { %1704 = vmatprep.mubr.msk.f32.mxu0 %vm101_vm0, %v36_v11 }
  0x18   :  { %1705 = vmatmul.mubr.msk.f32.gmra.mrb[8].mxu0 %vm101_vm0, %v37_v12 }
  0x19   :  { %1707 = vmatprep.mubr.msk.f32.mxu0 %vm101_vm0, %v38_v13 }
  0x1a   :  { %13 = vsyncpa [#allocation4], 0  ;;  %1925 = vmatprep.subr.bf16.mxu1 %v1924_v20  ;;  %v1928_v24 = vpack.c.bf16 %v748_v22, %v747_v21  ;;  %v41_v25 = vld [vmem:[%s2604_s0 + $0x68] sm:$0xff]  ;;  %v749_v26 = vld [vmem:[%s2607_s3 + $0x30] sm:$0xff]  ;;  %s2043_s22 = smov [#allocation3]  }
  0x1b   :  { %v750_v27 = vld [vmem:[%s2607_s3 + $0x38] sm:$0xff]  ;;  %v42_v28 = vld [vmem:[%s2604_s0 + $0x70] sm:$0xff]  ;;  %1927 = vmatpush3.bf16.msra.mxu1 %v1924_v20  ;;  %v751_v31 = vld [vmem:[%s2607_s3 + $0x40] sm:$0xff] }
  0x1c   :  { %1708 = vmatmul.mubr.msk.f32.gmra.mrb[10].mxu0 %vm101_vm0, %v39_v19  ;;  %1929 = vmatprep.subr.bf16.mxu1 %v1928_v24  ;;  %v1932_v29 = vpack.c.bf16 %v750_v27, %v749_v26  ;;  %v43_v30 = vld [vmem:[%s2604_s0 + $0x78] sm:$0xff]  ;;  %v752_v32 = vld [vmem:[%s2607_s3 + $0x48] sm:$0xff]  ;;  %v44_v33 = vld [vmem:[%s2604_s0 + $0x80] sm:$0xff] }
  0x1d   :  { %1710 = vmatprep.mubr.msk.f32.mxu0 %vm101_vm0, %v40_v23  ;;  %v1936_v34 = vpack.c.bf16 %v752_v32, %v751_v31  ;;  %v45_v35 = vld [vmem:[%s2604_s0 + $0x88] sm:$0xff]  ;;  %v753_v36 = vld [vmem:[%s2607_s3 + $0x50] sm:$0xff]  ;;  %v754_v37 = vld [vmem:[%s2607_s3 + $0x58] sm:$0xff] }
  0x1e   :  { %v46_v38 = vld [vmem:[%s2604_s0 + $0x90] sm:$0xff]  ;;  %v1940_v39 = vpack.c.bf16 %v754_v37, %v753_v36  ;;  %v47_v40 = vld [vmem:[%s2604_s0 + $0x98] sm:$0xff]  ;;  %v755_v41 = vld [vmem:[%s2607_s3 + $0x60] sm:$0xff] }
  0x1f   :  { %1931 = vmatpush3.bf16.msra.mxu1 %v1928_v24  ;;  %v756_v42 = vld [vmem:[%s2607_s3 + $0x68] sm:$0xff]  ;;  %v48_v43 = vld [vmem:[%s2604_s0 + $0xa0] sm:$0xff]  ;;  %v50_v46 = vld [vmem:[%s2604_s0 + $0xb0] sm:$0xff] }
  0x20   :  { %1711 = vmatmul.mubr.msk.f32.gmra.mrb[12].mxu0 %vm101_vm0, %v41_v25  ;;  %1933 = vmatprep.subr.bf16.mxu1 %v1932_v29  ;;  %v1944_v44 = vpack.c.bf16 %v756_v42, %v755_v41  ;;  %v49_v45 = vld [vmem:[%s2604_s0 + $0xa8] sm:$0xff]  ;;  %v51_v47 = vld [vmem:[%s2604_s0 + $0xb8] sm:$0xff]  ;;  %v52_v48 = vld [vmem:[%s2604_s0 + $0xc0] sm:$0xff] }
  0x21   :  { %1713 = vmatprep.mubr.msk.f32.mxu0 %vm101_vm0, %v42_v28  ;;  %v53_v49 = vld [vmem:[%s2604_s0 + $0xc8] sm:$0xff]  ;;  %v54_v50 = vld [vmem:[%s2604_s0 + $0xd0] sm:$0xff]  ;;  %v55_v51 = vld [vmem:[%s2604_s0 + $0xd8] sm:$0xff] }
  0x22   :  { %v56_v52 = vld [vmem:[%s2604_s0 + $0xe0] sm:$0xff]  ;;  %v57_v53 = vld [vmem:[%s2604_s0 + $0xe8] sm:$0xff]  ;;  %v58_v54 = vld [vmem:[%s2604_s0 + $0xf0] sm:$0xff] }
  0x23   :  { %1935 = vmatpush3.bf16.msra.mxu1 %v1932_v29  ;;  %v59_v55 = vld [vmem:[%s2604_s0 + $0xf8] sm:$0xff]  ;;  %v60_v56 = vld [vmem:[%s2604_s0 + $0x100] sm:$0xff]  ;;  %v61_v57 = vld [vmem:[%s2604_s0 + $0x108] sm:$0xff] }
  0x24   :  { %1714 = vmatmul.mubr.msk.f32.gmra.mrb[14].mxu0 %vm101_vm0, %v43_v30  ;;  %1937 = vmatprep.subr.bf16.mxu1 %v1936_v34  ;;  %v62_v58 = vld [vmem:[%s2604_s0 + $0x110] sm:$0xff]  ;;  %v63_v59 = vld [vmem:[%s2604_s0 + $0x118] sm:$0xff]  ;;  %v64_v60 = vld [vmem:[%s2604_s0 + $0x120] sm:$0xff] }
  0x25   :  { %1716 = vmatprep.mubr.msk.f32.mxu0 %vm101_vm0, %v44_v33  ;;  %v65_v61 = vld [vmem:[%s2604_s0 + $0x128] sm:$0xff]  ;;  %v66_v62 = vld [vmem:[%s2604_s0 + $0x130] sm:$0xff]  ;;  %v67_v63 = vld [vmem:[%s2604_s0 + $0x138] sm:$0xff] }
  0x26   :  { %v68_v0 = vld [vmem:[%s2604_s0 + $0x140] sm:$0xff]  ;;  %v69_v1 = vld [vmem:[%s2604_s0 + $0x148] sm:$0xff]  ;;  %v70_v2 = vld [vmem:[%s2604_s0 + $0x150] sm:$0xff] }
  0x27   :  { %1939 = vmatpush3.bf16.msra.mxu1 %v1936_v34  ;;  %v71_v3 = vld [vmem:[%s2604_s0 + $0x158] sm:$0xff]  ;;  %v72_v4 = vld [vmem:[%s2604_s0 + $0x160] sm:$0xff]  ;;  %v757_v5 = vld [vmem:[%s2607_s3 + $0x70] sm:$0xff] }
  0x28   :  { %1717 = vmatmul.mubr.msk.f32.gmra.mrb[16].mxu0 %vm101_vm0, %v45_v35  ;;  %1941 = vmatprep.subr.bf16.mxu1 %v1940_v39  ;;  %v758_v6 = vld [vmem:[%s2607_s3 + $0x78] sm:$0xff]  ;;  %v73_v8 = vld [vmem:[%s2604_s0 + $0x168] sm:$0xff]  ;;  %v74_v9 = vld [vmem:[%s2604_s0 + $0x170] sm:$0xff] }
  0x29   :  { %1719 = vmatprep.mubr.msk.f32.mxu0 %vm101_vm0, %v46_v38  ;;  %v1948_v7 = vpack.c.bf16 %v758_v6, %v757_v5  ;;  %v75_v10 = vld [vmem:[%s2604_s0 + $0x178] sm:$0xff]  ;;  %v76_v11 = vld [vmem:[%s2604_s0 + $0x180] sm:$0xff]  ;;  %v77_v12 = vld [vmem:[%s2604_s0 + $0x188] sm:$0xff] }
  0x2a   :  { %v78_v13 = vld [vmem:[%s2604_s0 + $0x190] sm:$0xff]  ;;  %v79_v14 = vld [vmem:[%s2604_s0 + $0x198] sm:$0xff]  ;;  %v80_v15 = vld [vmem:[%s2604_s0 + $0x1a0] sm:$0xff] }
  0x2b   :  { %1943 = vmatpush3.bf16.msra.mxu1 %v1940_v39  ;;  %v81_v16 = vld [vmem:[%s2604_s0 + $0x1a8] sm:$0xff]  ;;  %v82_v17 = vld [vmem:[%s2604_s0 + $0x1b0] sm:$0xff]  ;;  %v83_v18 = vld [vmem:[%s2604_s0 + $0x1b8] sm:$0xff] }
  0x2c   :  { %1720 = vmatmul.mubr.msk.f32.gmra.mrb[18].mxu0 %vm101_vm0, %v47_v40  ;;  %1945 = vmatprep.subr.bf16.mxu1 %v1944_v44  ;;  %v84_v19 = vld [vmem:[%s2604_s0 + $0x1c0] sm:$0xff]  ;;  %v85_v20 = vld [vmem:[%s2604_s0 + $0x1c8] sm:$0xff]  ;;  %v86_v21 = vld [vmem:[%s2604_s0 + $0x1d0] sm:$0xff] }
  0x2d   :  { %1722 = vmatprep.mubr.msk.f32.mxu0 %vm101_vm0, %v48_v43  ;;  %v87_v22 = vld [vmem:[%s2604_s0 + $0x1d8] sm:$0xff]  ;;  %v88_v23 = vld [vmem:[%s2604_s0 + $0x1e0] sm:$0xff]  ;;  %v89_v24 = vld [vmem:[%s2604_s0 + $0x1e8] sm:$0xff] }
  0x2e   :  { %v90_v25 = vld [vmem:[%s2604_s0 + $0x1f0] sm:$0xff]  ;;  %v91_v26 = vld [vmem:[%s2604_s0 + $0x1f8] sm:$0xff]  ;;  %v2397_v27 = vld [vmem:[%s2606_s2] ss:$0 sm:$0xff] }
  0x2f   :  { %1947 = vmatpush3.bf16.msra.mxu1 %v1944_v44 }
  0x30   :  { %1723 = vmatmul.mubr.msk.f32.gmra.mrb[20].mxu0 %vm101_vm0, %v49_v45  ;;  %1949 = vmatprep.subr.bf16.mxu1 %v1948_v7 }
  0x31   :  { %1725 = vmatprep.mubr.msk.f32.mxu0 %vm101_vm0, %v50_v46 }
  0x33   :  { %1951 = vmatpush3.bf16.msra.mxu1 %v1948_v7 }
  0x34   :  { %1726 = vmatmul.mubr.msk.f32.gmra.mrb[22].mxu0 %vm101_vm0, %v51_v47 }
  0x35   :  { %1728 = vmatprep.mubr.msk.f32.mxu0 %vm101_vm0, %v52_v48 }
  0x38   :  { %1729 = vmatmul.mubr.msk.f32.gmra.mrb[24].mxu0 %vm101_vm0, %v53_v49 }
  0x39   :  { %1731 = vmatprep.mubr.msk.f32.mxu0 %vm101_vm0, %v54_v50 }
  0x3c   :  { %1732 = vmatmul.mubr.msk.f32.gmra.mrb[26].mxu0 %vm101_vm0, %v55_v51 }
  0x3d   :  { %1734 = vmatprep.mubr.msk.f32.mxu0 %vm101_vm0, %v56_v52 }
  0x40   :  { %1735 = vmatmul.mubr.msk.f32.gmra.mrb[28].mxu0 %vm101_vm0, %v57_v53 }
  0x41   :  { %1737 = vmatprep.mubr.msk.f32.mxu0 %vm101_vm0, %v58_v54 }
  0x44   :  { %1738 = vmatmul.mubr.msk.f32.gmra.mrb[30].mxu0 %vm101_vm0, %v59_v55 }
  0x45   :  { %1740 = vmatprep.mubr.msk.f32.mxu0 %vm101_vm0, %v60_v56 }
  0x48   :  { %1741 = vmatmul.mubr.msk.f32.gmra.mrb[32].mxu0 %vm101_vm0, %v61_v57 }
  0x49   :  { %1743 = vmatprep.mubr.msk.f32.mxu0 %vm101_vm0, %v62_v58 }
  0x4c   :  { %1744 = vmatmul.mubr.msk.f32.gmra.mrb[34].mxu0 %vm101_vm0, %v63_v59 }
  0x4d   :  { %1746 = vmatprep.mubr.msk.f32.mxu0 %vm101_vm0, %v64_v60 }
  0x50   :  { %1747 = vmatmul.mubr.msk.f32.gmra.mrb[36].mxu0 %vm101_vm0, %v65_v61 }
  0x51   :  { %1749 = vmatprep.mubr.msk.f32.mxu0 %vm101_vm0, %v66_v62 }
  0x54   :  { %1750 = vmatmul.mubr.msk.f32.gmra.mrb[38].mxu0 %vm101_vm0, %v67_v63 }
  0x55   :  { %1752 = vmatprep.mubr.msk.f32.mxu0 %vm101_vm0, %v68_v0 }
  0x58   :  { %1753 = vmatmul.mubr.msk.f32.gmra.mrb[40].mxu0 %vm101_vm0, %v69_v1 }
  0x59   :  { %1755 = vmatprep.mubr.msk.f32.mxu0 %vm101_vm0, %v70_v2 }
  0x5c   :  { %1756 = vmatmul.mubr.msk.f32.gmra.mrb[42].mxu0 %vm101_vm0, %v71_v3 }
  0x5d   :  { %1758 = vmatprep.mubr.msk.f32.mxu0 %vm101_vm0, %v72_v4 }
  0x60   :  { %1759 = vmatmul.mubr.msk.f32.gmra.mrb[44].mxu0 %vm101_vm0, %v73_v8 }
  0x61   :  { %1761 = vmatprep.mubr.msk.f32.mxu0 %vm101_vm0, %v74_v9 }
  0x64   :  { %1762 = vmatmul.mubr.msk.f32.gmra.mrb[46].mxu0 %vm101_vm0, %v75_v10 }
  0x65   :  { %1764 = vmatprep.mubr.msk.f32.mxu0 %vm101_vm0, %v76_v11 }
  0x68   :  { %1765 = vmatmul.mubr.msk.f32.gmra.mrb[48].mxu0 %vm101_vm0, %v77_v12 }
  0x69   :  { %1767 = vmatprep.mubr.msk.f32.mxu0 %vm101_vm0, %v78_v13 }
  0x6c   :  { %1768 = vmatmul.mubr.msk.f32.gmra.mrb[50].mxu0 %vm101_vm0, %v79_v14 }
  0x6d   :  { %1770 = vmatprep.mubr.msk.f32.mxu0 %vm101_vm0, %v80_v15 }
  0x70   :  { %1771 = vmatmul.mubr.msk.f32.gmra.mrb[52].mxu0 %vm101_vm0, %v81_v16 }
  0x71   :  { %1773 = vmatprep.mubr.msk.f32.mxu0 %vm101_vm0, %v82_v17 }
  0x74   :  { %1774 = vmatmul.mubr.msk.f32.gmra.mrb[54].mxu0 %vm101_vm0, %v83_v18 }
  0x75   :  { %1776 = vmatprep.mubr.msk.f32.mxu0 %vm101_vm0, %v84_v19 }
  0x78   :  { %1777 = vmatmul.mubr.msk.f32.gmra.mrb[56].mxu0 %vm101_vm0, %v85_v20 }
  0x79   :  { %1779 = vmatprep.mubr.msk.f32.mxu0 %vm101_vm0, %v86_v21 }
  0x7c   :  { %1780 = vmatmul.mubr.msk.f32.gmra.mrb[58].mxu0 %vm101_vm0, %v87_v22 }
  0x7d   :  { %1782 = vmatprep.mubr.msk.f32.mxu0 %vm101_vm0, %v88_v23 }
  0x80   :  { %1783 = vmatmul.mubr.msk.f32.gmra.mrb[60].mxu0 %vm101_vm0, %v89_v24 }
  0x81   :  { %1785 = vmatprep.mubr.msk.f32.mxu0 %vm101_vm0, %v90_v25 }
  0x84   :  { %1786 = vmatmul.mubr.msk.f32.gmra.mrb[62].mxu0 %vm101_vm0, %v91_v26 }
  0xdb   :  { %v1694_v28 = vpop.f32.mrb[0].mxu0 }
  0xdc   :  { %v366_v29 = vadd.f32 %v1694_v28, %v2397_v27  ;;  %v360_v30 = vpop.f32.mrb[1].mxu0 }
  0xdd   :  { %v361_v31 = vadd.f32 %v2397_v27, %v360_v30 }
  0xde   :  { %v680_v34 = vmax.f32 %v366_v29, 0.0 }
  0xdf   :  { %v1697_v32 = vpop.f32.mrb[2].mxu0  ;;  %v679_v33 = vmax.f32 %v361_v31, 0.0 }
  0xe0   :  { %v376_v35 = vadd.f32 %v1697_v32, %v2397_v27  ;;  %v370_v36 = vpop.f32.mrb[3].mxu0 }
  0xe1   :  { %v371_v37 = vadd.f32 %v2397_v27, %v370_v36  ;;  %1820 = vmatprep.mubr.f32.mxu1 %v679_v33 }
  0xe2   :  { %1821 = vmatmul.mubr.f32.vlgmr.msra.gmra.mrb[0].mxu1 %v680_v34  ;;  %v682_v40 = vmax.f32 %v376_v35, 0.0 }
  0xe3   :  { %v681_v38 = vmax.f32 %v371_v37, 0.0  ;;  %v1700_v39 = vpop.f32.mrb[4].mxu0 }
  0xe4   :  { %v386_v41 = vadd.f32 %v1700_v39, %v2397_v27  ;;  %v380_v42 = vpop.f32.mrb[5].mxu0 }
  0xe5   :  { %v381_v43 = vadd.f32 %v2397_v27, %v380_v42  ;;  %1823 = vmatprep.mubr.f32.mxu1 %v681_v38 }
  0xe6   :  { %1824 = vmatmul.mubr.f32.gmra.mrb[2].mxu1 %v682_v40  ;;  %v684_v46 = vmax.f32 %v386_v41, 0.0 }
  0xe7   :  { %v683_v44 = vmax.f32 %v381_v43, 0.0  ;;  %v1703_v45 = vpop.f32.mrb[6].mxu0 }
  0xe8   :  { %v396_v47 = vadd.f32 %v1703_v45, %v2397_v27  ;;  %v390_v48 = vpop.f32.mrb[7].mxu0 }
  0xe9   :  { %v391_v49 = vadd.f32 %v2397_v27, %v390_v48  ;;  %1826 = vmatprep.mubr.f32.mxu1 %v683_v44 }
  0xea   :  { %1827 = vmatmul.mubr.f32.gmra.mrb[4].mxu1 %v684_v46  ;;  %v686_v52 = vmax.f32 %v396_v47, 0.0 }
  0xeb   :  { %v685_v50 = vmax.f32 %v391_v49, 0.0  ;;  %v1706_v51 = vpop.f32.mrb[8].mxu0 }
  0xec   :  { %v406_v53 = vadd.f32 %v1706_v51, %v2397_v27  ;;  %v400_v54 = vpop.f32.mrb[9].mxu0 }
  0xed   :  { %v401_v55 = vadd.f32 %v2397_v27, %v400_v54  ;;  %1829 = vmatprep.mubr.f32.mxu1 %v685_v50 }
  0xee   :  { %1830 = vmatmul.mubr.f32.gmra.mrb[6].mxu1 %v686_v52  ;;  %v688_v58 = vmax.f32 %v406_v53, 0.0 }
  0xef   :  { %v687_v56 = vmax.f32 %v401_v55, 0.0  ;;  %v1709_v57 = vpop.f32.mrb[10].mxu0 }
  0xf0   :  { %v416_v59 = vadd.f32 %v1709_v57, %v2397_v27  ;;  %v410_v60 = vpop.f32.mrb[11].mxu0 }
  0xf1   :  { %v411_v61 = vadd.f32 %v2397_v27, %v410_v60  ;;  %1832 = vmatprep.mubr.f32.mxu1 %v687_v56 }
  0xf2   :  { %1833 = vmatmul.mubr.f32.gmra.mrb[8].mxu1 %v688_v58  ;;  %v690_v0 = vmax.f32 %v416_v59, 0.0 }
  0xf3   :  { %v689_v62 = vmax.f32 %v411_v61, 0.0  ;;  %v1712_v63 = vpop.f32.mrb[12].mxu0 }
  0xf4   :  { %v426_v1 = vadd.f32 %v1712_v63, %v2397_v27  ;;  %v420_v2 = vpop.f32.mrb[13].mxu0 }
  0xf5   :  { %v421_v3 = vadd.f32 %v2397_v27, %v420_v2  ;;  %1835 = vmatprep.mubr.f32.mxu1 %v689_v62 }
  0xf6   :  { %1836 = vmatmul.mubr.f32.gmra.mrb[10].mxu1 %v690_v0  ;;  %v692_v6 = vmax.f32 %v426_v1, 0.0 }
  0xf7   :  { %v691_v4 = vmax.f32 %v421_v3, 0.0  ;;  %v1715_v5 = vpop.f32.mrb[14].mxu0 }
  0xf8   :  { %v436_v7 = vadd.f32 %v1715_v5, %v2397_v27  ;;  %v430_v8 = vpop.f32.mrb[15].mxu0 }
  0xf9   :  { %v431_v9 = vadd.f32 %v2397_v27, %v430_v8  ;;  %1838 = vmatprep.mubr.f32.mxu1 %v691_v4 }
  0xfa   :  { %1839 = vmatmul.mubr.f32.gmra.mrb[12].mxu1 %v692_v6  ;;  %v694_v12 = vmax.f32 %v436_v7, 0.0 }
  0xfb   :  { %v693_v10 = vmax.f32 %v431_v9, 0.0  ;;  %v1718_v11 = vpop.f32.mrb[16].mxu0 }
  0xfc   :  { %v446_v13 = vadd.f32 %v1718_v11, %v2397_v27  ;;  %v440_v14 = vpop.f32.mrb[17].mxu0 }
  0xfd   :  { %v441_v15 = vadd.f32 %v2397_v27, %v440_v14  ;;  %1841 = vmatprep.mubr.f32.mxu1 %v693_v10 }
  0xfe   :  { %1842 = vmatmul.mubr.f32.gmra.mrb[14].mxu1 %v694_v12  ;;  %v696_v18 = vmax.f32 %v446_v13, 0.0 }
  0xff   :  { %v695_v16 = vmax.f32 %v441_v15, 0.0  ;;  %v1721_v17 = vpop.f32.mrb[18].mxu0 }
 0x100   :  { %v456_v19 = vadd.f32 %v1721_v17, %v2397_v27  ;;  %v450_v20 = vpop.f32.mrb[19].mxu0 }
 0x101   :  { %v451_v21 = vadd.f32 %v2397_v27, %v450_v20  ;;  %1844 = vmatprep.mubr.f32.mxu1 %v695_v16 }
 0x102   :  { %1845 = vmatmul.mubr.f32.gmra.mrb[16].mxu1 %v696_v18  ;;  %v698_v24 = vmax.f32 %v456_v19, 0.0 }
 0x103   :  { %v697_v22 = vmax.f32 %v451_v21, 0.0  ;;  %v1724_v23 = vpop.f32.mrb[20].mxu0 }
 0x104   :  { %v466_v25 = vadd.f32 %v1724_v23, %v2397_v27  ;;  %v460_v26 = vpop.f32.mrb[21].mxu0 }
 0x105   :  { %v461_v28 = vadd.f32 %v2397_v27, %v460_v26  ;;  %1847 = vmatprep.mubr.f32.mxu1 %v697_v22 }
 0x106   :  { %1848 = vmatmul.mubr.f32.gmra.mrb[18].mxu1 %v698_v24  ;;  %v700_v31 = vmax.f32 %v466_v25, 0.0 }
 0x107   :  { %v699_v29 = vmax.f32 %v461_v28, 0.0  ;;  %v1727_v30 = vpop.f32.mrb[22].mxu0 }
 0x108   :  { %v476_v32 = vadd.f32 %v1727_v30, %v2397_v27  ;;  %v470_v33 = vpop.f32.mrb[23].mxu0 }
 0x109   :  { %v471_v34 = vadd.f32 %v2397_v27, %v470_v33  ;;  %1850 = vmatprep.mubr.f32.mxu1 %v699_v29 }
 0x10a   :  { %1851 = vmatmul.mubr.f32.gmra.mrb[20].mxu1 %v700_v31  ;;  %v702_v37 = vmax.f32 %v476_v32, 0.0 }
 0x10b   :  { %v701_v35 = vmax.f32 %v471_v34, 0.0  ;;  %v1730_v36 = vpop.f32.mrb[24].mxu0 }
 0x10c   :  { %v486_v38 = vadd.f32 %v1730_v36, %v2397_v27  ;;  %v480_v39 = vpop.f32.mrb[25].mxu0 }
 0x10d   :  { %v481_v40 = vadd.f32 %v2397_v27, %v480_v39  ;;  %1853 = vmatprep.mubr.f32.mxu1 %v701_v35 }
 0x10e   :  { %1854 = vmatmul.mubr.f32.gmra.mrb[22].mxu1 %v702_v37  ;;  %v704_v43 = vmax.f32 %v486_v38, 0.0 }
 0x10f   :  { %v703_v41 = vmax.f32 %v481_v40, 0.0  ;;  %v1733_v42 = vpop.f32.mrb[26].mxu0 }
 0x110   :  { %v496_v44 = vadd.f32 %v1733_v42, %v2397_v27  ;;  %v490_v45 = vpop.f32.mrb[27].mxu0 }
 0x111   :  { %v491_v46 = vadd.f32 %v2397_v27, %v490_v45  ;;  %1856 = vmatprep.mubr.f32.mxu1 %v703_v41 }
 0x112   :  { %1857 = vmatmul.mubr.f32.gmra.mrb[24].mxu1 %v704_v43  ;;  %v706_v49 = vmax.f32 %v496_v44, 0.0 }
 0x113   :  { %v705_v47 = vmax.f32 %v491_v46, 0.0  ;;  %v1736_v48 = vpop.f32.mrb[28].mxu0 }
 0x114   :  { %v506_v50 = vadd.f32 %v1736_v48, %v2397_v27  ;;  %v500_v51 = vpop.f32.mrb[29].mxu0 }
 0x115   :  { %v501_v52 = vadd.f32 %v2397_v27, %v500_v51  ;;  %1859 = vmatprep.mubr.f32.mxu1 %v705_v47 }
 0x116   :  { %1860 = vmatmul.mubr.f32.gmra.mrb[26].mxu1 %v706_v49  ;;  %v708_v55 = vmax.f32 %v506_v50, 0.0 }
 0x117   :  { %v707_v53 = vmax.f32 %v501_v52, 0.0  ;;  %v1739_v54 = vpop.f32.mrb[30].mxu0 }
 0x118   :  { %v516_v56 = vadd.f32 %v1739_v54, %v2397_v27  ;;  %v510_v57 = vpop.f32.mrb[31].mxu0 }
 0x119   :  { %v511_v58 = vadd.f32 %v2397_v27, %v510_v57  ;;  %1862 = vmatprep.mubr.f32.mxu1 %v707_v53 }
 0x11a   :  { %1863 = vmatmul.mubr.f32.gmra.mrb[28].mxu1 %v708_v55  ;;  %v710_v61 = vmax.f32 %v516_v56, 0.0 }
 0x11b   :  { %v709_v59 = vmax.f32 %v511_v58, 0.0  ;;  %v1742_v60 = vpop.f32.mrb[32].mxu0 }
 0x11c   :  { %v526_v62 = vadd.f32 %v1742_v60, %v2397_v27  ;;  %v520_v63 = vpop.f32.mrb[33].mxu0 }
 0x11d   :  { %v521_v0 = vadd.f32 %v2397_v27, %v520_v63  ;;  %1865 = vmatprep.mubr.f32.mxu1 %v709_v59 }
 0x11e   :  { %1866 = vmatmul.mubr.f32.gmra.mrb[30].mxu1 %v710_v61  ;;  %v712_v3 = vmax.f32 %v526_v62, 0.0 }
 0x11f   :  { %v711_v1 = vmax.f32 %v521_v0, 0.0  ;;  %v1745_v2 = vpop.f32.mrb[34].mxu0 }
 0x120   :  { %v536_v4 = vadd.f32 %v1745_v2, %v2397_v27  ;;  %v530_v5 = vpop.f32.mrb[35].mxu0 }
 0x121   :  { %v531_v6 = vadd.f32 %v2397_v27, %v530_v5  ;;  %1868 = vmatprep.mubr.f32.mxu1 %v711_v1 }
 0x122   :  { %1869 = vmatmul.mubr.f32.gmra.mrb[32].mxu1 %v712_v3  ;;  %v714_v9 = vmax.f32 %v536_v4, 0.0 }
 0x123   :  { %v713_v7 = vmax.f32 %v531_v6, 0.0  ;;  %v1748_v8 = vpop.f32.mrb[36].mxu0 }
 0x124   :  { %v546_v10 = vadd.f32 %v1748_v8, %v2397_v27  ;;  %v540_v11 = vpop.f32.mrb[37].mxu0 }
 0x125   :  { %v541_v12 = vadd.f32 %v2397_v27, %v540_v11  ;;  %1871 = vmatprep.mubr.f32.mxu1 %v713_v7 }
 0x126   :  { %1872 = vmatmul.mubr.f32.gmra.mrb[34].mxu1 %v714_v9  ;;  %v716_v15 = vmax.f32 %v546_v10, 0.0 }
 0x127   :  { %v715_v13 = vmax.f32 %v541_v12, 0.0  ;;  %v1751_v14 = vpop.f32.mrb[38].mxu0 }
 0x128   :  { %v556_v16 = vadd.f32 %v1751_v14, %v2397_v27  ;;  %v550_v17 = vpop.f32.mrb[39].mxu0 }
 0x129   :  { %v551_v18 = vadd.f32 %v2397_v27, %v550_v17  ;;  %1874 = vmatprep.mubr.f32.mxu1 %v715_v13 }
 0x12a   :  { %1875 = vmatmul.mubr.f32.gmra.mrb[36].mxu1 %v716_v15  ;;  %v718_v21 = vmax.f32 %v556_v16, 0.0 }
 0x12b   :  { %v717_v19 = vmax.f32 %v551_v18, 0.0  ;;  %v1754_v20 = vpop.f32.mrb[40].mxu0 }
 0x12c   :  { %v566_v22 = vadd.f32 %v1754_v20, %v2397_v27  ;;  %v560_v23 = vpop.f32.mrb[41].mxu0 }
 0x12d   :  { %v561_v24 = vadd.f32 %v2397_v27, %v560_v23  ;;  %1877 = vmatprep.mubr.f32.mxu1 %v717_v19 }
 0x12e   :  { %1878 = vmatmul.mubr.f32.gmra.mrb[38].mxu1 %v718_v21  ;;  %v720_v28 = vmax.f32 %v566_v22, 0.0 }
 0x12f   :  { %v719_v25 = vmax.f32 %v561_v24, 0.0  ;;  %v1757_v26 = vpop.f32.mrb[42].mxu0 }
 0x130   :  { %v576_v29 = vadd.f32 %v1757_v26, %v2397_v27  ;;  %v570_v30 = vpop.f32.mrb[43].mxu0 }
 0x131   :  { %v571_v31 = vadd.f32 %v2397_v27, %v570_v30  ;;  %1880 = vmatprep.mubr.f32.mxu1 %v719_v25 }
 0x132   :  { %1881 = vmatmul.mubr.f32.gmra.mrb[40].mxu1 %v720_v28  ;;  %v722_v34 = vmax.f32 %v576_v29, 0.0 }
 0x133   :  { %v721_v32 = vmax.f32 %v571_v31, 0.0  ;;  %v1760_v33 = vpop.f32.mrb[44].mxu0  ;;  %v2466_v31 = vld [vmem:[%s2608_s4] ss:$0 sm:$0xff] }
 0x134   :  { %v586_v35 = vadd.f32 %v1760_v33, %v2397_v27  ;;  %v580_v36 = vpop.f32.mrb[45].mxu0 }
 0x135   :  { %v581_v37 = vadd.f32 %v2397_v27, %v580_v36  ;;  %1883 = vmatprep.mubr.f32.mxu1 %v721_v32 }
 0x136   :  { %1884 = vmatmul.mubr.f32.gmra.mrb[42].mxu1 %v722_v34  ;;  %v724_v40 = vmax.f32 %v586_v35, 0.0 }
 0x137   :  { %v723_v38 = vmax.f32 %v581_v37, 0.0  ;;  %v1763_v39 = vpop.f32.mrb[46].mxu0 }
 0x138   :  { %v596_v41 = vadd.f32 %v1763_v39, %v2397_v27  ;;  %v590_v42 = vpop.f32.mrb[47].mxu0 }
 0x139   :  { %v591_v43 = vadd.f32 %v2397_v27, %v590_v42  ;;  %1886 = vmatprep.mubr.f32.mxu1 %v723_v38 }
 0x13a   :  { %1887 = vmatmul.mubr.f32.gmra.mrb[44].mxu1 %v724_v40  ;;  %v726_v46 = vmax.f32 %v596_v41, 0.0 }
 0x13b   :  { %v725_v44 = vmax.f32 %v591_v43, 0.0  ;;  %v1766_v45 = vpop.f32.mrb[48].mxu0 }
 0x13c   :  { %v606_v47 = vadd.f32 %v1766_v45, %v2397_v27  ;;  %v600_v48 = vpop.f32.mrb[49].mxu0 }
 0x13d   :  { %v601_v49 = vadd.f32 %v2397_v27, %v600_v48  ;;  %1889 = vmatprep.mubr.f32.mxu1 %v725_v44 }
 0x13e   :  { %1890 = vmatmul.mubr.f32.gmra.mrb[46].mxu1 %v726_v46  ;;  %v728_v52 = vmax.f32 %v606_v47, 0.0 }
 0x13f   :  { %v727_v50 = vmax.f32 %v601_v49, 0.0  ;;  %v1769_v51 = vpop.f32.mrb[50].mxu0 }
 0x140   :  { %v616_v53 = vadd.f32 %v1769_v51, %v2397_v27  ;;  %v610_v54 = vpop.f32.mrb[51].mxu0 }
 0x141   :  { %1892 = vmatprep.mubr.f32.mxu1 %v727_v50  ;;  %v611_v55 = vadd.f32 %v2397_v27, %v610_v54 }
 0x142   :  { %1893 = vmatmul.mubr.f32.gmra.mrb[48].mxu1 %v728_v52  ;;  %v730_v56 = vmax.f32 %v616_v53, 0.0 }
 0x143   :  { %v729_v57 = vmax.f32 %v611_v55, 0.0  ;;  %v1772_v58 = vpop.f32.mrb[52].mxu0 }
 0x144   :  { %v626_v59 = vadd.f32 %v1772_v58, %v2397_v27  ;;  %v620_v60 = vpop.f32.mrb[53].mxu0 }
 0x145   :  { %1895 = vmatprep.mubr.f32.mxu1 %v729_v57  ;;  %v621_v61 = vadd.f32 %v2397_v27, %v620_v60 }
 0x146   :  { %1896 = vmatmul.mubr.f32.gmra.mrb[50].mxu1 %v730_v56  ;;  %v732_v62 = vmax.f32 %v626_v59, 0.0 }
 0x147   :  { %v731_v63 = vmax.f32 %v621_v61, 0.0  ;;  %v1775_v0 = vpop.f32.mrb[54].mxu0 }
 0x148   :  { %v636_v1 = vadd.f32 %v1775_v0, %v2397_v27  ;;  %v630_v2 = vpop.f32.mrb[55].mxu0 }
 0x149   :  { %1898 = vmatprep.mubr.f32.mxu1 %v731_v63  ;;  %v631_v3 = vadd.f32 %v2397_v27, %v630_v2 }
 0x14a   :  { %1899 = vmatmul.mubr.f32.gmra.mrb[52].mxu1 %v732_v62  ;;  %v734_v4 = vmax.f32 %v636_v1, 0.0 }
 0x14b   :  { %v733_v5 = vmax.f32 %v631_v3, 0.0  ;;  %v1778_v6 = vpop.f32.mrb[56].mxu0 }
 0x14c   :  { %v646_v7 = vadd.f32 %v1778_v6, %v2397_v27  ;;  %v640_v8 = vpop.f32.mrb[57].mxu0 }
 0x14d   :  { %1901 = vmatprep.mubr.f32.mxu1 %v733_v5  ;;  %v641_v9 = vadd.f32 %v2397_v27, %v640_v8 }
 0x14e   :  { %1902 = vmatmul.mubr.f32.gmra.mrb[54].mxu1 %v734_v4  ;;  %v736_v10 = vmax.f32 %v646_v7, 0.0 }
 0x14f   :  { %v735_v11 = vmax.f32 %v641_v9, 0.0  ;;  %v1781_v12 = vpop.f32.mrb[58].mxu0 }
 0x150   :  { %v656_v13 = vadd.f32 %v1781_v12, %v2397_v27  ;;  %v650_v14 = vpop.f32.mrb[59].mxu0 }
 0x151   :  { %1904 = vmatprep.mubr.f32.mxu1 %v735_v11  ;;  %v651_v15 = vadd.f32 %v2397_v27, %v650_v14 }
 0x152   :  { %1905 = vmatmul.mubr.f32.gmra.mrb[56].mxu1 %v736_v10  ;;  %v738_v16 = vmax.f32 %v656_v13, 0.0 }
 0x153   :  { %v737_v17 = vmax.f32 %v651_v15, 0.0  ;;  %v1784_v18 = vpop.f32.mrb[60].mxu0 }
 0x154   :  { %v666_v19 = vadd.f32 %v1784_v18, %v2397_v27  ;;  %v660_v20 = vpop.f32.mrb[61].mxu0 }
 0x155   :  { %1907 = vmatprep.mubr.f32.mxu1 %v737_v17  ;;  %v661_v21 = vadd.f32 %v2397_v27, %v660_v20 }
 0x156   :  { %1908 = vmatmul.mubr.f32.gmra.mrb[58].mxu1 %v738_v16  ;;  %v740_v22 = vmax.f32 %v666_v19, 0.0 }
 0x157   :  { %v739_v23 = vmax.f32 %v661_v21, 0.0  ;;  %v1787_v24 = vpop.f32.mrb[62].mxu0 }
 0x158   :  { %v676_v25 = vadd.f32 %v1787_v24, %v2397_v27  ;;  %v670_v26 = vpop.f32.mrb[63].mxu0 }
 0x159   :  { %1910 = vmatprep.mubr.f32.mxu1 %v739_v23  ;;  %v671_v28 = vadd.f32 %v2397_v27, %v670_v26 }
 0x15a   :  { %1911 = vmatmul.mubr.f32.gmra.mrb[60].mxu1 %v740_v22  ;;  %v742_v29 = vmax.f32 %v676_v25, 0.0  ;;  %v2502_v25 = vld [vmem:[%s2609_s5] sm:$0x1] }
 0x15b   :  { %v741_v30 = vmax.f32 %v671_v28, 0.0  ;;  %1652 = vmatprep.mubr.f32.mxu0 %v2502_v25 }
 0x15d   :  { %1913 = vmatprep.mubr.f32.mxu1 %v741_v30 }
 0x15e   :  { %1914 = vmatmul.mubr.f32.gmra.mrb[62].mxu1 %v742_v29 }
 0x15f   :  { %1686 = vmatprep.mubr.f32.mxu1 %v2502_v25 }
 0x1b5   :  { %v1822_v32 = vpop.f32.mrb[0].mxu1 }
 0x1b6   :  { %v838_v33 = vadd.f32 %v1822_v32, %v2466_v31  ;;  %v832_v34 = vpop.f32.mrb[1].mxu1 }
 0x1b7   :  { %v833_v35 = vadd.f32 %v2466_v31, %v832_v34 }
 0x1b8   :  { %v1152_v36 = vmax.f32 %v838_v33, 0.0 }
 0x1b9   :  { %v1151_v37 = vmax.f32 %v833_v35, 0.0  ;;  %v1825_v38 = vpop.f32.mrb[2].mxu1 }
 0x1ba   :  { %v848_v27 = vadd.f32 %v1825_v38, %v2466_v31  ;;  %v842_v39 = vpop.f32.mrb[3].mxu1 }
 0x1bb   :  { %v2471_v40 = vpack.c.bf16 %v1152_v36, %v1151_v37  ;;  %v843_v41 = vadd.f32 %v2466_v31, %v842_v39 }
 0x1bc   :  { %v1154_v42 = vmax.f32 %v848_v27, 0.0 }
 0x1bd   :  { %v1153_v43 = vmax.f32 %v843_v41, 0.0  ;;  %v1828_v44 = vpop.f32.mrb[4].mxu1 }
 0x1be   :  { %v858_v45 = vadd.f32 %v1828_v44, %v2466_v31  ;;  %v852_v46 = vpop.f32.mrb[5].mxu1 }
 0x1bf   :  { %v2475_v47 = vpack.c.bf16 %v1154_v42, %v1153_v43  ;;  %v853_v48 = vadd.f32 %v2466_v31, %v852_v46 }
 0x1c0   :  { %v1156_v49 = vmax.f32 %v858_v45, 0.0 }
 0x1c1   :  { %v1155_v50 = vmax.f32 %v853_v48, 0.0  ;;  %v1831_v51 = vpop.f32.mrb[6].mxu1 }
 0x1c2   :  { %v868_v52 = vadd.f32 %v1831_v51, %v2466_v31  ;;  %v862_v53 = vpop.f32.mrb[7].mxu1 }
 0x1c3   :  { %v2479_v54 = vpack.c.bf16 %v1156_v49, %v1155_v50  ;;  %v863_v55 = vadd.f32 %v2466_v31, %v862_v53 }
 0x1c4   :  { %v1158_v56 = vmax.f32 %v868_v52, 0.0 }
 0x1c5   :  { %v1157_v57 = vmax.f32 %v863_v55, 0.0  ;;  %v1834_v58 = vpop.f32.mrb[8].mxu1 }
 0x1c6   :  { %v878_v59 = vadd.f32 %v1834_v58, %v2466_v31  ;;  %v872_v60 = vpop.f32.mrb[9].mxu1 }
 0x1c7   :  { %v2483_v61 = vpack.c.bf16 %v1158_v56, %v1157_v57  ;;  %v873_v62 = vadd.f32 %v2466_v31, %v872_v60 }
 0x1c8   :  { %v1160_v63 = vmax.f32 %v878_v59, 0.0 }
 0x1c9   :  { %v1159_v0 = vmax.f32 %v873_v62, 0.0  ;;  %v1837_v1 = vpop.f32.mrb[10].mxu1 }
 0x1ca   :  { %v888_v2 = vadd.f32 %v1837_v1, %v2466_v31  ;;  %v882_v3 = vpop.f32.mrb[11].mxu1 }
 0x1cb   :  { %v2487_v4 = vpack.c.bf16 %v1160_v63, %v1159_v0  ;;  %v883_v5 = vadd.f32 %v2466_v31, %v882_v3 }
 0x1cc   :  { %v1162_v6 = vmax.f32 %v888_v2, 0.0 }
 0x1cd   :  { %v1161_v7 = vmax.f32 %v883_v5, 0.0  ;;  %v1840_v8 = vpop.f32.mrb[12].mxu1 }
 0x1ce   :  { %v898_v9 = vadd.f32 %v1840_v8, %v2466_v31  ;;  %v892_v10 = vpop.f32.mrb[13].mxu1 }
 0x1cf   :  { %v2491_v11 = vpack.c.bf16 %v1162_v6, %v1161_v7  ;;  %v893_v12 = vadd.f32 %v2466_v31, %v892_v10 }
 0x1d0   :  { %v1164_v13 = vmax.f32 %v898_v9, 0.0 }
 0x1d1   :  { %v1163_v14 = vmax.f32 %v893_v12, 0.0  ;;  %v1843_v15 = vpop.f32.mrb[14].mxu1 }
 0x1d2   :  { %v908_v16 = vadd.f32 %v1843_v15, %v2466_v31  ;;  %v902_v17 = vpop.f32.mrb[15].mxu1 }
 0x1d3   :  { %v2495_v18 = vpack.c.bf16 %v1164_v13, %v1163_v14  ;;  %v903_v19 = vadd.f32 %v2466_v31, %v902_v17 }
 0x1d4   :  { %v1166_v20 = vmax.f32 %v908_v16, 0.0 }
 0x1d5   :  { %v1165_v21 = vmax.f32 %v903_v19, 0.0  ;;  %v1846_v22 = vpop.f32.mrb[16].mxu1 }
 0x1d6   :  { %v918_v23 = vadd.f32 %v1846_v22, %v2466_v31  ;;  %v912_v24 = vpop.f32.mrb[17].mxu1 }
 0x1d7   :  { %v2504_v26 = vpack.c.bf16 %v1166_v20, %v1165_v21  ;;  %v913_v28 = vadd.f32 %v2466_v31, %v912_v24 }
 0x1d8   :  { %v1168_v29 = vmax.f32 %v918_v23, 0.0 }
 0x1d9   :  { %v1167_v30 = vmax.f32 %v913_v28, 0.0  ;;  %v1849_v32 = vpop.f32.mrb[18].mxu1 }
 0x1da   :  { %v928_v33 = vadd.f32 %v1849_v32, %v2466_v31  ;;  %v922_v34 = vpop.f32.mrb[19].mxu1 }
 0x1db   :  { %v1952_v35 = vpack.c.bf16 %v1168_v29, %v1167_v30  ;;  %v923_v36 = vadd.f32 %v2466_v31, %v922_v34 }
 0x1dc   :  { %v1170_v37 = vmax.f32 %v928_v33, 0.0 }
 0x1dd   :  { %v1169_v38 = vmax.f32 %v923_v36, 0.0  ;;  %v1852_v27 = vpop.f32.mrb[20].mxu1  ;;  %1953 = vmatprep.subr.bf16.mxu0 %v1952_v35 }
 0x1de   :  { %v938_v39 = vadd.f32 %v1852_v27, %v2466_v31  ;;  %v932_v41 = vpop.f32.mrb[21].mxu1  ;;  %1955 = vmatpush3.bf16.xpose.msra.mxu0 %v2471_v40 }
 0x1df   :  { %v1956_v42 = vpack.c.bf16 %v1170_v37, %v1169_v38  ;;  %v933_v43 = vadd.f32 %v2466_v31, %v932_v41 }
 0x1e0   :  { %v1172_v44 = vmax.f32 %v938_v39, 0.0 }
 0x1e1   :  { %v1171_v45 = vmax.f32 %v933_v43, 0.0  ;;  %v1855_v46 = vpop.f32.mrb[22].mxu1  ;;  %1957 = vmatprep.subr.bf16.mxu0 %v1956_v42 }
 0x1e2   :  { %v948_v48 = vadd.f32 %v1855_v46, %v2466_v31  ;;  %v942_v49 = vpop.f32.mrb[23].mxu1 }
 0x1e3   :  { %v1960_v50 = vpack.c.bf16 %v1172_v44, %v1171_v45  ;;  %v943_v51 = vadd.f32 %v2466_v31, %v942_v49 }
 0x1e4   :  { %v1174_v52 = vmax.f32 %v948_v48, 0.0 }
 0x1e5   :  { %v1173_v53 = vmax.f32 %v943_v51, 0.0  ;;  %v1858_v55 = vpop.f32.mrb[24].mxu1 }
 0x1e6   :  { %v958_v56 = vadd.f32 %v1858_v55, %v2466_v31  ;;  %v952_v57 = vpop.f32.mrb[25].mxu1  ;;  %1959 = vmatpush3.bf16.xpose.msra.mxu0 %v2475_v47 }
 0x1e7   :  { %v1964_v40 = vpack.c.bf16 %v1174_v52, %v1173_v53  ;;  %v953_v58 = vadd.f32 %v2466_v31, %v952_v57  ;;  %1961 = vmatprep.subr.bf16.mxu0 %v1960_v50 }
 0x1e8   :  { %v1176_v59 = vmax.f32 %v958_v56, 0.0 }
 0x1e9   :  { %v1175_v60 = vmax.f32 %v953_v58, 0.0  ;;  %v1861_v62 = vpop.f32.mrb[26].mxu1 }
 0x1ea   :  { %v968_v63 = vadd.f32 %v1861_v62, %v2466_v31  ;;  %v962_v0 = vpop.f32.mrb[27].mxu1 }
 0x1eb   :  { %v1968_v1 = vpack.c.bf16 %v1176_v59, %v1175_v60  ;;  %v963_v2 = vadd.f32 %v2466_v31, %v962_v0 }
 0x1ec   :  { %v1178_v3 = vmax.f32 %v968_v63, 0.0 }
 0x1ed   :  { %v1177_v5 = vmax.f32 %v963_v2, 0.0  ;;  %v1864_v6 = vpop.f32.mrb[28].mxu1 }
 0x1ee   :  { %v978_v7 = vadd.f32 %v1864_v6, %v2466_v31  ;;  %v972_v8 = vpop.f32.mrb[29].mxu1  ;;  %1963 = vmatpush3.bf16.xpose.msra.mxu0 %v2479_v54 }
 0x1ef   :  { %v1972_v47 = vpack.c.bf16 %v1178_v3, %v1177_v5  ;;  %v973_v9 = vadd.f32 %v2466_v31, %v972_v8  ;;  %1965 = vmatprep.subr.bf16.mxu0 %v1964_v40 }
 0x1f0   :  { %v1180_v10 = vmax.f32 %v978_v7, 0.0 }
 0x1f1   :  { %v1179_v12 = vmax.f32 %v973_v9, 0.0  ;;  %v1867_v13 = vpop.f32.mrb[30].mxu1 }
 0x1f2   :  { %v988_v14 = vadd.f32 %v1867_v13, %v2466_v31  ;;  %v982_v15 = vpop.f32.mrb[31].mxu1 }
 0x1f3   :  { %v1976_v16 = vpack.c.bf16 %v1180_v10, %v1179_v12  ;;  %v983_v17 = vadd.f32 %v2466_v31, %v982_v15 }
 0x1f4   :  { %v1182_v19 = vmax.f32 %v988_v14, 0.0 }
 0x1f5   :  { %v1181_v20 = vmax.f32 %v983_v17, 0.0  ;;  %v1870_v21 = vpop.f32.mrb[32].mxu1 }
 0x1f6   :  { %v998_v22 = vadd.f32 %v1870_v21, %v2466_v31  ;;  %v992_v23 = vpop.f32.mrb[33].mxu1  ;;  %1967 = vmatpush3.bf16.xpose.msra.mxu0 %v2483_v61 }
 0x1f7   :  { %v1980_v54 = vpack.c.bf16 %v1182_v19, %v1181_v20  ;;  %v993_v24 = vadd.f32 %v2466_v31, %v992_v23  ;;  %1969 = vmatprep.subr.bf16.mxu0 %v1968_v1 }
 0x1f8   :  { %v1184_v28 = vmax.f32 %v998_v22, 0.0 }
 0x1f9   :  { %v1183_v29 = vmax.f32 %v993_v24, 0.0  ;;  %v1873_v30 = vpop.f32.mrb[34].mxu1 }
 0x1fa   :  { %v1008_v32 = vadd.f32 %v1873_v30, %v2466_v31  ;;  %v1002_v33 = vpop.f32.mrb[35].mxu1 }
 0x1fb   :  { %v2530_v34 = vpack.c.bf16 %v1184_v28, %v1183_v29  ;;  %v1003_v35 = vadd.f32 %v2466_v31, %v1002_v33 }
 0x1fc   :  { %v1186_v36 = vmax.f32 %v1008_v32, 0.0 }
 0x1fd   :  { %v1185_v37 = vmax.f32 %v1003_v35, 0.0  ;;  %v1876_v38 = vpop.f32.mrb[36].mxu1 }
 0x1fe   :  { %v1018_v27 = vadd.f32 %v1876_v38, %v2466_v31  ;;  %v1012_v61 = vpop.f32.mrb[37].mxu1  ;;  %1971 = vmatpush3.bf16.xpose.msra.mxu0 %v2487_v4 }
 0x1ff   :  { %v2535_v39 = vpack.c.bf16 %v1186_v36, %v1185_v37  ;;  %v1013_v41 = vadd.f32 %v2466_v31, %v1012_v61  ;;  %1973 = vmatprep.subr.bf16.mxu0 %v1972_v47 }
 0x200   :  { %v1188_v42 = vmax.f32 %v1018_v27, 0.0 }
 0x201   :  { %v1187_v43 = vmax.f32 %v1013_v41, 0.0  ;;  %v1879_v44 = vpop.f32.mrb[38].mxu1 }
 0x202   :  { %v1028_v45 = vadd.f32 %v1879_v44, %v2466_v31  ;;  %v1022_v46 = vpop.f32.mrb[39].mxu1 }
 0x203   :  { %v2539_v48 = vpack.c.bf16 %v1188_v42, %v1187_v43  ;;  %v1023_v49 = vadd.f32 %v2466_v31, %v1022_v46 }
 0x204   :  { %v1190_v50 = vmax.f32 %v1028_v45, 0.0 }
 0x205   :  { %v1189_v51 = vmax.f32 %v1023_v49, 0.0  ;;  %v1882_v52 = vpop.f32.mrb[40].mxu1 }
 0x206   :  { %v1038_v4 = vadd.f32 %v1882_v52, %v2466_v31  ;;  %v1032_v53 = vpop.f32.mrb[41].mxu1  ;;  %1975 = vmatpush3.bf16.xpose.msra.mxu0 %v2491_v11 }
 0x207   :  { %v2544_v55 = vpack.c.bf16 %v1190_v50, %v1189_v51  ;;  %v1033_v56 = vadd.f32 %v2466_v31, %v1032_v53  ;;  %1977 = vmatprep.subr.bf16.mxu0 %v1976_v16 }
 0x208   :  { %v1192_v57 = vmax.f32 %v1038_v4, 0.0 }
 0x209   :  { %v1191_v40 = vmax.f32 %v1033_v56, 0.0  ;;  %v1885_v58 = vpop.f32.mrb[42].mxu1 }
 0x20a   :  { %v1048_v59 = vadd.f32 %v1885_v58, %v2466_v31  ;;  %v1042_v60 = vpop.f32.mrb[43].mxu1 }
 0x20b   :  { %v2548_v62 = vpack.c.bf16 %v1192_v57, %v1191_v40  ;;  %v1043_v63 = vadd.f32 %v2466_v31, %v1042_v60 }
 0x20c   :  { %v1194_v0 = vmax.f32 %v1048_v59, 0.0 }
 0x20d   :  { %v1193_v1 = vmax.f32 %v1043_v63, 0.0  ;;  %v1888_v2 = vpop.f32.mrb[44].mxu1 }
 0x20e   :  { %v1058_v11 = vadd.f32 %v1888_v2, %v2466_v31  ;;  %v1052_v3 = vpop.f32.mrb[45].mxu1  ;;  %1979 = vmatpush3.bf16.xpose.msra.mxu0 %v2495_v18 }
 0x20f   :  { %v2553_v5 = vpack.c.bf16 %v1194_v0, %v1193_v1  ;;  %v1053_v6 = vadd.f32 %v2466_v31, %v1052_v3  ;;  %1981 = vmatprep.subr.bf16.mxu0 %v1980_v54 }
 0x210   :  { %v1196_v7 = vmax.f32 %v1058_v11, 0.0 }
 0x211   :  { %v1195_v8 = vmax.f32 %v1053_v6, 0.0  ;;  %v1891_v47 = vpop.f32.mrb[46].mxu1 }
 0x212   :  { %v1068_v9 = vadd.f32 %v1891_v47, %v2466_v31  ;;  %v1062_v10 = vpop.f32.mrb[47].mxu1 }
 0x213   :  { %v2557_v12 = vpack.c.bf16 %v1196_v7, %v1195_v8  ;;  %v1063_v13 = vadd.f32 %v2466_v31, %v1062_v10 }
 0x214   :  { %v1198_v14 = vmax.f32 %v1068_v9, 0.0 }
 0x215   :  { %v1197_v15 = vmax.f32 %v1063_v13, 0.0  ;;  %v1894_v16 = vpop.f32.mrb[48].mxu1 }
 0x216   :  { %v1078_v18 = vadd.f32 %v1894_v16, %v2466_v31  ;;  %v1072_v17 = vpop.f32.mrb[49].mxu1  ;;  %1983 = vmatpush3.bf16.xpose.msra.mxu0 %v2504_v26 }
 0x217   :  { %v2562_v19 = vpack.c.bf16 %v1198_v14, %v1197_v15  ;;  %v1073_v20 = vadd.f32 %v2466_v31, %v1072_v17  ;;  %v2042_v17 = vmov 1966171168  }
 0x218   :  { %v1200_v21 = vmax.f32 %v1078_v18, 0.0 }
 0x219   :  { %v1199_v22 = vmax.f32 %v1073_v20, 0.0  ;;  %v1897_v23 = vpop.f32.mrb[50].mxu1  ;;  %v1367_v20 = vunpack.c.l.s4 %v2042_v17 }
 0x21a   :  { %v1088_v54 = vadd.f32 %v1897_v23, %v2466_v31  ;;  %v1082_v24 = vpop.f32.mrb[51].mxu1 }
 0x21b   :  { %v1984_v28 = vpack.c.bf16 %v1200_v21, %v1199_v22  ;;  %v1083_v29 = vadd.f32 %v2466_v31, %v1082_v24  ;;  %v1368_v21 = vunpack.c.0.s8 %v1367_v20 }
 0x21c   :  { %v1202_v30 = vmax.f32 %v1088_v54, 0.0 }
 0x21d   :  { %1985 = vmatprep.subr.bf16.mxu1 %v1984_v28  ;;  %v1201_v32 = vmax.f32 %v1083_v29, 0.0  ;;  %v1900_v33 = vpop.f32.mrb[52].mxu1  ;;  %1653 = vmatmul.mubr.f32.vlgmr.msra.gmra.mrb[64].mxu0 %v2502_v25 }
 0x21e   :  { %1987 = vmatpush3.bf16.xpose.msra.mxu1 %v2530_v34  ;;  %v1098_v26 = vadd.f32 %v1900_v33, %v2466_v31  ;;  %v1092_v35 = vpop.f32.mrb[53].mxu1 }
 0x21f   :  { %v1988_v36 = vpack.c.bf16 %v1202_v30, %v1201_v32  ;;  %v1093_v37 = vadd.f32 %v2466_v31, %v1092_v35 }
 0x220   :  { %v1204_v38 = vmax.f32 %v1098_v26, 0.0 }
 0x221   :  { %1989 = vmatprep.subr.bf16.mxu1 %v1988_v36  ;;  %v1203_v27 = vmax.f32 %v1093_v37, 0.0  ;;  %v1903_v61 = vpop.f32.mrb[54].mxu1 }
 0x222   :  { %v1108_v41 = vadd.f32 %v1903_v61, %v2466_v31  ;;  %v1102_v42 = vpop.f32.mrb[55].mxu1 }
 0x223   :  { %v1992_v43 = vpack.c.bf16 %v1204_v38, %v1203_v27  ;;  %v1103_v44 = vadd.f32 %v2466_v31, %v1102_v42 }
 0x224   :  { %v1206_v45 = vmax.f32 %v1108_v41, 0.0 }
 0x225   :  { %v1205_v46 = vmax.f32 %v1103_v44, 0.0  ;;  %v1906_v49 = vpop.f32.mrb[56].mxu1 }
 0x226   :  { %1991 = vmatpush3.bf16.xpose.msra.mxu1 %v2535_v39  ;;  %v1118_v34 = vadd.f32 %v1906_v49, %v2466_v31  ;;  %v1112_v50 = vpop.f32.mrb[57].mxu1 }
 0x227   :  { %1993 = vmatprep.subr.bf16.mxu1 %v1992_v43  ;;  %v1996_v51 = vpack.c.bf16 %v1206_v45, %v1205_v46  ;;  %v1113_v52 = vadd.f32 %v2466_v31, %v1112_v50 }
 0x228   :  { %v1208_v4 = vmax.f32 %v1118_v34, 0.0 }
 0x229   :  { %v1207_v53 = vmax.f32 %v1113_v52, 0.0  ;;  %v1909_v56 = vpop.f32.mrb[58].mxu1 }
 0x22a   :  { %v1128_v57 = vadd.f32 %v1909_v56, %v2466_v31  ;;  %v1122_v40 = vpop.f32.mrb[59].mxu1 }
 0x22b   :  { %v2000_v58 = vpack.c.bf16 %v1208_v4, %v1207_v53  ;;  %v1123_v59 = vadd.f32 %v2466_v31, %v1122_v40 }
 0x22c   :  { %v1210_v60 = vmax.f32 %v1128_v57, 0.0 }
 0x22d   :  { %v1209_v63 = vmax.f32 %v1123_v59, 0.0  ;;  %v1912_v0 = vpop.f32.mrb[60].mxu1 }
 0x22e   :  { %1995 = vmatpush3.bf16.xpose.msra.mxu1 %v2539_v48  ;;  %v1138_v39 = vadd.f32 %v1912_v0, %v2466_v31  ;;  %v1132_v1 = vpop.f32.mrb[61].mxu1 }
 0x22f   :  { %1997 = vmatprep.subr.bf16.mxu1 %v1996_v51  ;;  %v2004_v2 = vpack.c.bf16 %v1210_v60, %v1209_v63  ;;  %v1133_v11 = vadd.f32 %v2466_v31, %v1132_v1 }
 0x230   :  { %v1212_v3 = vmax.f32 %v1138_v39, 0.0 }
 0x231   :  { %v1211_v6 = vmax.f32 %v1133_v11, 0.0  ;;  %v1915_v7 = vpop.f32.mrb[62].mxu1 }
 0x232   :  { %v1148_v8 = vadd.f32 %v1915_v7, %v2466_v31  ;;  %v1142_v47 = vpop.f32.mrb[63].mxu1 }
 0x233   :  { %v2008_v9 = vpack.c.bf16 %v1212_v3, %v1211_v6  ;;  %v1143_v10 = vadd.f32 %v2466_v31, %v1142_v47  ;;  %v1217_v31 = vstv %s2610_s6  ;;  %s1400_s6 = sshll.u32 %s2043_s22, 4  ;;  %s1401_s6 = int_to_ptr.vmem [resolvable:$true] %s1400_s6 }
 0x234   :  { %v1214_v13 = vmax.f32 %v1148_v8, 0.0  ;;  %s2018_s23 = scalar_lea.vmem %s1401_s6, 64  ;;  %p2023_p1 = scmp.lt.s32.totalorder %s1401_s6, %s1401_s6 }
 0x235   :  { %v1213_v14 = vmax.f32 %v1143_v10, 0.0  ;;  %p2019_p0 = scmp.ne.s32.totalorder %s1401_s6, %s2018_s23  ;;  %p2024_p2 = scmp.lt.s32.totalorder %s2018_s23, %s2018_s23 }
 0x236   :  { %1999 = vmatpush3.bf16.xpose.msra.mxu1 %v2544_v55 }
 0x237   :  { %2001 = vmatprep.subr.bf16.mxu1 %v2000_v58  ;;  %v2012_v48 = vpack.c.bf16 %v1214_v13, %v1213_v14  ;;  %p2025_p3 = por %p2024_p2, %p2023_p1 }
 0x239   :  { %p2026_p4 = pnand %p2025_p3, %p2019_p0 }
 0x23e   :  { %2003 = vmatpush3.bf16.xpose.msra.mxu1 %v2548_v62 }
 0x23f   :  { %2005 = vmatprep.subr.bf16.mxu1 %v2004_v2 }
 0x246   :  { %2007 = vmatpush3.bf16.xpose.msra.mxu1 %v2553_v5  ;;  %v1369_v5 = vlaneseq }
 0x247   :  { %2009 = vmatprep.subr.bf16.mxu1 %v2008_v9 }
 0x248   :  { %v1370_v22 = vshrl.u32 %v1369_v5, 7  ;;  %vm1391_vm1 = vcmp.lt.s32.totalorder %v1369_v5, 512 }
 0x24a   :  { %v1371_v23 = vsub.s32 %v1368_v21, %v1370_v22 }
 0x24e   :  { %2011 = vmatpush3.bf16.xpose.msra.mxu1 %v2557_v12 }
 0x24f   :  { %2013 = vmatprep.subr.bf16.mxu1 %v2012_v48 }
 0x256   :  { %2015 = vmatpush3.bf16.xpose.msra.mxu1 %v2562_v19 }
 0x25d   :  { %1687 = vmatmul.mubr.f32.vlgmr.msra.gmra.mrb[64].mxu1 %v2502_v25 }
 0x2f0   :  { %v1284_v55 = vpop.f32.mrb[64].mxu0 }
 0x2f1   :  { %v1285_v15 = vadd.f32 %v1284_v55, %v1217_v31  ;;  %v1286_v16 = vpop.f32.mrb[65].mxu0 }
 0x2f2   :  { %v1287_v18 = vadd.f32 %v1286_v16, %v1217_v31 }
 0x2f4   :  { %v1364_v62 = vcombine.low %v1285_v15, %v1287_v18 }
 0x2f6   :  { %v1372_v25 = vrot.slane %v1364_v62, %v1371_v23 }
 0x330   :  { %v1355_v12 = vpop.f32.mrb[64].mxu1 }
 0x331   :  { %v1356_v54 = vadd.f32 %v1355_v12, %v1217_v31  ;;  %v1357_v19 = vpop.f32.mrb[65].mxu1 }
 0x332   :  { %v1358_v24 = vadd.f32 %v1357_v19, %v1217_v31 }
 0x334   :  { %v1365_v28 = vcombine.low %v1356_v54, %v1358_v24 }
 0x336   :  { %v1379_v29 = vrot.slane %v1365_v28, %v1371_v23 }
 0x338   :  { %v1380_v30 = vcombine.low %v1372_v25, %v1379_v29 }
 0x33a   :  { %v1387_v32 = vrot.slane %v1380_v30, %v1371_v23 }
 0x33c   :  { %1393 = vst.msk [vmem:[#allocation3] sm:$0xf] %vm1391_vm1, %v1387_v32 }
 0x33d   :  { %2029 = shalt.err (!%p2026_p4)
}
 0x33e   :  { %s2030_s26 = scalar_lea.hbm %s2611_s7, 64 }
 0x33f   :  { %p2031_p5 = scmp.ne.s32.totalorder %s2611_s7, %s2030_s26  ;;  %p2034_p6 = scmp.lt.u32.totalorder %s2030_s26, %s2611_s7 }
 0x341   :  { %p2036_p7 = pnand %p2034_p6, %p2031_p5 }
 0x343   :  { %2039 = shalt.err (!%p2036_p7)
}
 0x344   :  { %1403 = dma.vmem_to_hbm [thread:$0]  %s1401_s6, 64, %s2611_s7, [#allocation4]  }
 0x345   :  { %2040 = dma.done.wait [#allocation4], 64  }
 0x346   :  { %2041 = vsyncadd [#allocation4], 4294967232 }
 0x347   :  { %1407 = vsyncpa [#allocation4], 1 }

</bundles_post_ra>
